<compile_context>
chip_gen: v5e
topology: v5e:2x2
jax: 0.10.0
libtpu: 0.0.40
codegen_flags: <defaults>
</compile_context>

<pallas_src>
import jax
import jax.numpy as jnp
from jax.experimental import pallas as pl
from jax.experimental.pallas import tpu as pltpu

IN_FEATURES = 3
HIDDEN = 64
LANE = 128


def _round_up(v: int, m: int) -> int:
    return ((v + m - 1) // m) * m


def _cdiv(a: int, b: int) -> int:
    return -(-a // b)


def mlp_kernel(x_ref, w1_ref, b1_ref, w2_ref, b2_ref, o_ref):
    # x_ref : (3, TB)   f32, batch on lanes (lane-dense)
    # w1_ref: (64, 3)   compute dtype (bf16 or f32), grid-resident
    # b1_ref: (64, 1)   f32, grid-resident
    # w2_ref: (1, 64)   compute dtype, grid-resident
    # b2_ref: (1, 1)    f32 SMEM scalar
    # o_ref : (1, TB)   f32, lane-dense store
    cd = w1_ref.dtype
    # Full precision only matters for the f32 debug path; bf16 uses MXU-native.
    prec = jax.lax.Precision.HIGHEST if cd == jnp.float32 else None

    x = x_ref[...].astype(cd)                                  # (3, TB)

    # fc1 on the MXU: (64,3) @ (3,TB) -> (64,TB), f32 accumulate.
    h = jnp.dot(w1_ref[...], x,
                preferred_element_type=jnp.float32, precision=prec)
    # bias + ReLU on the VPU (f32).
    h = jnp.maximum(h + b1_ref[...], 0.0)                      # (64, TB)

    # fc2 on the MXU: (1,64) @ (64,TB) -> (1,TB), f32 accumulate.
    y = jnp.dot(w2_ref[...], h.astype(cd),
                preferred_element_type=jnp.float32, precision=prec)
    o_ref[...] = (y + b2_ref[0, 0]).astype(o_ref.dtype)


def house_price_forward(x, w1, b1, w2, b2, *, tile_b=32768,
                        compute_dtype=jnp.bfloat16):
    """Forward pass.

    x : (B, 3) float
    w1: (64, 3), b1: (64,), w2: (1, 64), b2: (1,)   (PyTorch nn.Linear layout)
    returns (B, 1) float32
    """
    B = x.shape[0]

    # --- tile sizing -------------------------------------------------------
    b_pad = _round_up(B, LANE)                      # batch rounded to lanes
    tb = _round_up(min(int(tile_b), b_pad), LANE)   # requested, lane-aligned
    n_steps = _cdiv(b_pad, tb)
    if b_pad >= 2 * LANE:
        n_steps = max(n_steps, 2)                   # >=2 steps: v7x uses both TCs
    tb = _round_up(_cdiv(b_pad, n_steps), LANE)     # balance tiles (min padding)
    bp = n_steps * tb

    # --- parameter packing -------------------------------------------------
    w1k = w1.reshape(HIDDEN, IN_FEATURES).astype(compute_dtype)   # (64, 3)
    b1k = b1.reshape(HIDDEN, 1).astype(jnp.float32)               # (64, 1)
    w2k = w2.reshape(1, HIDDEN).astype(compute_dtype)             # (1, 64)
    b2k = b2.reshape(1, 1).astype(jnp.float32)                    # (1, 1) SMEM

    # Batch on the lane axis.
    # TODO(synk): the (B,3)->(3,bp) transpose+pad is one extra (fused) XLA copy
    # over x; an in-kernel ragged-tail mask (clamped index_map + pl.when) would
    # remove the pad and leave only the layout flip.
    xt = jnp.pad(x.astype(jnp.float32).T, ((0, 0), (0, bp - B)))  # (3, bp)

    out_t = pl.pallas_call(
        mlp_kernel,
        out_shape=jax.ShapeDtypeStruct((1, bp), jnp.float32),
        grid=(bp // tb,),
        in_specs=[
            pl.BlockSpec((IN_FEATURES, tb), lambda i: (0, i)),        # x tile
            pl.BlockSpec((HIDDEN, IN_FEATURES), lambda i: (0, 0)),    # w1 resident
            pl.BlockSpec((HIDDEN, 1), lambda i: (0, 0)),              # b1 resident
            pl.BlockSpec((1, HIDDEN), lambda i: (0, 0)),              # w2 resident
            pl.BlockSpec(memory_space=pltpu.MemorySpace.SMEM),        # b2 scalar
        ],
        out_specs=pl.BlockSpec((1, tb), lambda i: (0, i)),
        compiler_params=pltpu.CompilerParams(
            dimension_semantics=("parallel",),
            vmem_limit_bytes=48 * 1024 * 1024,
        ),
    )(xt, w1k, b1k, w2k, b2k)

    return out_t[:, :B].T                                             # (B, 1)


def init_params(key):
    # Mimic nn.Linear default init (uniform +/- 1/sqrt(fan_in)), PyTorch layout.
    k1, k2, k3, k4 = jax.random.split(key, 4)
    bound1 = 1.0 / jnp.sqrt(3.0)
    bound2 = 1.0 / jnp.sqrt(64.0)
    w1 = jax.random.uniform(k1, (HIDDEN, IN_FEATURES), jnp.float32, -bound1, bound1)
    b1 = jax.random.uniform(k2, (HIDDEN,), jnp.float32, -bound1, bound1)
    w2 = jax.random.uniform(k3, (1, HIDDEN), jnp.float32, -bound2, bound2)
    b2 = jax.random.uniform(k4, (1,), jnp.float32, -bound2, bound2)
    return w1, b1, w2, b2


def _reference(x, w1, b1, w2, b2):
    return jnp.maximum(x @ w1.T + b1, 0.0) @ w2.T + b2


if __name__ == "__main__":
    key = jax.random.PRNGKey(0)
    kx, kx2, kp = jax.random.split(key, 3)
    w1, b1, w2, b2 = init_params(kp)

    # Small correctness check (batch = 8).
    batch = 8
    x = jax.random.normal(kx, (batch, IN_FEATURES), jnp.float32)
    ref = _reference(x, w1, b1, w2, b2)

    # Default bf16-on-MXU path (loose tolerance: bf16 operands, f32 accumulate).
    out = jax.block_until_ready(house_price_forward(x, w1, b1, w2, b2))
    assert out.shape == (batch, 1)
    assert jnp.allclose(out, ref, atol=5e-2, rtol=5e-2)

    # f32 path with HIGHEST precision: tight structural check of the kernel.
    out32 = jax.block_until_ready(
        house_price_forward(x, w1, b1, w2, b2, compute_dtype=jnp.float32))
    assert jnp.allclose(out32, ref, atol=1e-4, rtol=1e-4)

    # Exercise the multi-step grid + ragged-batch padding path.
    batch2 = 300
    x2 = jax.random.normal(kx2, (batch2, IN_FEATURES), jnp.float32)
    out2 = jax.block_until_ready(
        house_price_forward(x2, w1, b1, w2, b2, tile_b=128))
    ref2 = _reference(x2, w1, b1, w2, b2)
    assert out2.shape == (batch2, 1)
    assert jnp.allclose(out2, ref2, atol=5e-2, rtol=5e-2)

    print("KERNEL_OK")
</pallas_src>

<mosaic_0001>
module attributes {stable_mosaic.version = 11 : i64} {
  func.func @mlp_kernel(%arg0: i32, %arg1: memref<3x128xf32, #tpu.memory_space<vmem>>, %arg2: memref<64x3xbf16, #tpu.memory_space<vmem>>, %arg3: memref<64x1xf32, #tpu.memory_space<vmem>>, %arg4: memref<1x64xbf16, #tpu.memory_space<vmem>>, %arg5: memref<1x1xf32, #tpu.memory_space<smem>>, %arg6: memref<1x128xf32, #tpu.memory_space<vmem>>) attributes {dimension_semantics = [#tpu.dimension_semantics<parallel>], iteration_bounds = array<i64: 1>, scalar_prefetch = 0 : i64, scratch_operands = 0 : i64, tpu.core_type = #tpu.core_type<tc>, window_params = [{transform_indices = @transform_0, window_bounds = array<i64: 3, 128>}, {pipeline_mode = #tpu.pipeline_mode<synchronous>, transform_indices = @transform_1, window_bounds = array<i64: 64, 3>}, {pipeline_mode = #tpu.pipeline_mode<synchronous>, transform_indices = @transform_2, window_bounds = array<i64: 64, 1>}, {pipeline_mode = #tpu.pipeline_mode<synchronous>, transform_indices = @transform_3, window_bounds = array<i64: 1, 64>}, {transform_indices = @transform_4, window_bounds = array<i64: 1, 1>}, {transform_indices = @transform_5, window_bounds = array<i64: 1, 128>}]} {
    %c0 = arith.constant 0 : index
    %c0_0 = arith.constant 0 : index
    %0 = vector.load %arg1[%c0, %c0_0] : memref<3x128xf32, #tpu.memory_space<vmem>>, vector<3x128xf32>
    %1 = arith.truncf %0 : vector<3x128xf32> to vector<3x128xbf16>
    %c0_1 = arith.constant 0 : index
    %c0_2 = arith.constant 0 : index
    %2 = vector.load %arg2[%c0_1, %c0_2] : memref<64x3xbf16, #tpu.memory_space<vmem>>, vector<64x3xbf16>
    %cst = arith.constant dense<0.000000e+00> : vector<64x128xf32>
    %3 = tpu.matmul %2, %1, %cst {dimension_numbers = #tpu.dot_dimension_numbers<[1], [0], [0], [1], [0, 0, 1, 1], [], []>} : vector<64x3xbf16>, vector<3x128xbf16>, vector<64x128xf32> -> vector<64x128xf32>
    %c0_3 = arith.constant 0 : index
    %c0_4 = arith.constant 0 : index
    %4 = vector.load %arg3[%c0_3, %c0_4] : memref<64x1xf32, #tpu.memory_space<vmem>>, vector<64x1xf32>
    %5 = vector.broadcast %4 : vector<64x1xf32> to vector<64x128xf32>
    %6 = arith.addf %3, %5 : vector<64x128xf32>
    %cst_5 = arith.constant 0.000000e+00 : f32
    %7 = vector.broadcast %cst_5 : f32 to vector<64x128xf32>
    %8 = arith.maximumf %6, %7 : vector<64x128xf32>
    %c0_6 = arith.constant 0 : index
    %c0_7 = arith.constant 0 : index
    %9 = vector.load %arg4[%c0_6, %c0_7] : memref<1x64xbf16, #tpu.memory_space<vmem>>, vector<1x64xbf16>
    %10 = arith.truncf %8 : vector<64x128xf32> to vector<64x128xbf16>
    %cst_8 = arith.constant dense<0.000000e+00> : vector<1x128xf32>
    %11 = tpu.matmul %9, %10, %cst_8 {dimension_numbers = #tpu.dot_dimension_numbers<[1], [0], [0], [1], [0, 0, 1, 1], [], []>} : vector<1x64xbf16>, vector<64x128xbf16>, vector<1x128xf32> -> vector<1x128xf32>
    %c0_9 = arith.constant 0 : index
    %c0_10 = arith.constant 0 : index
    %12 = memref.load %arg5[%c0_9, %c0_10] : memref<1x1xf32, #tpu.memory_space<smem>>
    %13 = vector.broadcast %12 : f32 to vector<1x128xf32>
    %14 = arith.addf %11, %13 : vector<1x128xf32>
    %c0_11 = arith.constant 0 : index
    %c0_12 = arith.constant 0 : index
    %15 = vector.load %arg6[%c0_11, %c0_12] : memref<1x128xf32, #tpu.memory_space<vmem>>, vector<1x128xf32>
    tpu.vector_store %arg6[%c0_11, %c0_12], %14 {strides = array<i32>} : memref<1x128xf32, #tpu.memory_space<vmem>>, vector<1x128xf32>,
    return
  }
  func.func @transform_0(%arg0: i32) -> (i32, i32) {
    %c0_i32 = arith.constant 0 : i32
    %c0_i32_0 = arith.constant 0 : i32
    return %c0_i32, %arg0 : i32, i32
  }
  func.func @transform_1(%arg0: i32) -> (i32, i32) {
    %c0_i32 = arith.constant 0 : i32
    %c0_i32_0 = arith.constant 0 : i32
    %c0_i32_1 = arith.constant 0 : i32
    return %c0_i32, %c0_i32_0 : i32, i32
  }
  func.func @transform_2(%arg0: i32) -> (i32, i32) {
    %c0_i32 = arith.constant 0 : i32
    %c0_i32_0 = arith.constant 0 : i32
    %c0_i32_1 = arith.constant 0 : i32
    return %c0_i32, %c0_i32_0 : i32, i32
  }
  func.func @transform_3(%arg0: i32) -> (i32, i32) {
    %c0_i32 = arith.constant 0 : i32
    %c0_i32_0 = arith.constant 0 : i32
    %c0_i32_1 = arith.constant 0 : i32
    return %c0_i32, %c0_i32_0 : i32, i32
  }
  func.func @transform_4(%arg0: i32) -> (i32, i32) {
    %c0_i32 = arith.constant 0 : i32
    %c0_i32_0 = arith.constant 0 : i32
    %c0_i32_1 = arith.constant 0 : i32
    return %c0_i32, %c0_i32_0 : i32, i32
  }
  func.func @transform_5(%arg0: i32) -> (i32, i32) {
    %c0_i32 = arith.constant 0 : i32
    %c0_i32_0 = arith.constant 0 : i32
    return %c0_i32, %arg0 : i32, i32
  }
}

</mosaic_0001>

<bundles_post_ra>
// kernel: tpu_custom_call.1
= control target key start
LH: loop header
LB: loop body
LE: loop exit
PB: predicated region body
PF: predicated region fallthrough
CT: control target
= control target key end

     0   :  { %vm114_vm0 = vcmask 1040384   ;;  %vm115_vm1 = vcmask 1041408   ;;  %v258_v2 = vmov 65535   ;;  %v259_v6 = vmov 0   ;;  %s343_s0 = inlined_call_operand.vmem [shape: f32[3,128], index: 0, kind: input, shape index: {}]   ;;  %s344_s1 = inlined_call_operand.vmem [shape: bf16[64,3], index: 1, kind: input, shape index: {}]   ;;  %s345_s2 = inlined_call_operand.vmem [shape: f32[64,1], index: 2, kind: input, shape index: {}]   ;;  %s346_s3 = inlined_call_operand.vmem [shape: bf16[1,64], index: 3, kind: input, shape index: {}]   ;;  %s347_s4 = inlined_call_operand.<no memory space> [shape: f32[1,1], index: 4, kind: input, shape index: {}]   ;;  %s348_s5 = inlined_call_operand.hbm [shape: f32[1,128], index: 5, kind: output, shape index: {}]  }
   0x1   :  { %v23_v0 = vld [vmem:[%s343_s0] sm:$0x7]  ;;  %v116_v3 = vsel %vm114_vm0, 4294967295, %v258_v2  ;;  %v39_v4 = vld [vmem:[%s345_s2 + $0x30] sm:$0xff]  ;;  %230 = vset.pattern.permute.xlu1 %v259_v6  ;;  %229 = vset.pattern.permute.xlu0 %v259_v6  ;;  %v221_v9 = vld [vmem:[%s344_s1 + $0x8] sm:$0xff] }
   0x2   :  { %v24_v1 = vpack.c.bf16 %v23_v0, %v23_v0  ;;  %v117_v5 = vsel %vm115_vm1, %v116_v3, 0  ;;  %v37_v7 = vld [vmem:[%s345_s2 + $0x20] sm:$0xff]  ;;  %73 = vperm.xlu0 %229, %v39_v4   ;;  %v223_v10 = vld [vmem:[%s344_s1 + $0x18] sm:$0xff]  ;;  %231 = vset.pattern.permute.xlu2 %v259_v6  ;;  %v35_v11 = vld [vmem:[%s345_s2 + $0x10] sm:$0xff] }
   0x3   :  { %63 = vperm.xlu1 %230, %v37_v7  }
   0x4   :  { %v119_v8 = vand.u32 %v117_v5, %v24_v1 }
   0x5   :  { %11 = vsyncpa [#allocation4], 0  ;;  %vm101_vm2 = vcmask 23552   ;;  %v220_v12 = vld [vmem:[%s344_s1] sm:$0xff]  ;;  %53 = vperm.xlu2 %231, %v35_v11   ;;  %v40_v13 = vld [vmem:[%s345_s2 + $0x38] sm:$0xff]  ;;  %vm165_vm3 = vcmask 523264   ;;  %v164_v56 = vstv %s347_s4 }
   0x6   :  { %224 = vmatpush.bf16.msra.mxu2 %v119_v8  ;;  %225 = vmatpush.bf16.msra.mxu3 %v119_v8  ;;  %v38_v14 = vld [vmem:[%s345_s2 + $0x28] sm:$0xff]  ;;  %v36_v15 = vld [vmem:[%s345_s2 + $0x18] sm:$0xff]  ;;  %v33_v17 = vld [vmem:[%s345_s2] sm:$0xff]  ;;  %s260_s20 = smov [#allocation3]   ;;  %s190_s24 = sshll.u32 %s348_s5, 4  ;;  %s191_s24 = int_to_ptr.hbm [resolvable:$true] %s190_s24 }
   0x7   :  { %128 = vmatpush.bf16.msra.mxu0 %v119_v8  ;;  %v34_v16 = vld [vmem:[%s345_s2 + $0x8] sm:$0xff]  ;;  %v222_v18 = vld [vmem:[%s344_s1 + $0x10] sm:$0xff]  ;;  %v158_v55 = vld [vmem:[%s346_s3] sm:$0x1]  ;;  %s188_s21 = sshll.u32 %s260_s20, 4  ;;  %s189_s21 = int_to_ptr.vmem [resolvable:$true] %s188_s21 }
   0x9   :  { %216 = vmatmul.msk.bf16.vlgmr.msra.gmra.mxu2 %vm101_vm2, %v221_v9  ;;  %218 = vmatmul.msk.bf16.vlgmr.msra.gmra.mxu3 %vm101_vm2, %v223_v10 }
   0xa   :  { %215 = vmatmul.msk.bf16.vlgmr.msra.gmra.mxu0 %vm101_vm2, %v220_v12  ;;  %78 = vperm.xlu0 %229, %v40_v13  }
   0xb   :  { %68 = vperm.xlu1 %230, %v38_v14  }
   0xd   :  { %58 = vperm.xlu2 %231, %v36_v15  }
  0x12   :  { %43 = vperm.xlu0 %229, %v33_v17  }
  0x13   :  { %48 = vperm.xlu1 %230, %v34_v16  }
  0x19   :  { %217 = vmatmul.msk.bf16.gmra.mxu2 %vm101_vm2, %v222_v18 }
  0x5f   :  { %v54_v30 = vpop.permute.xlu2 %53 }
  0x67   :  { %v59_v35 = vpop.permute.xlu2 %58 }
  0x74   :  { %v74_v19 = vpop.permute.xlu0 %73 }
  0x75   :  { %v64_v22 = vpop.permute.xlu1 %63 }
  0x7c   :  { %v79_v24 = vpop.permute.xlu0 %78 }
  0x7d   :  { %v69_v32 = vpop.permute.xlu1 %68 }
  0x84   :  { %v44_v41 = vpop.permute.xlu0 %43 }
  0x85   :  { %v49_v39 = vpop.permute.xlu1 %48 }
  0x87   :  { %v130_v33 = vpop.f32.mrf.mxu0 }
  0x88   :  { %v131_v47 = vadd.f32 %v130_v33, %v44_v41 }
  0x8a   :  { %v150_v51 = vmax.f32 %v131_v47, 0.0 }
  0x8c   :  { %v135_v20 = vpop.f32.mrf.mxu2  ;;  %v145_v21 = vpop.f32.mrf.mxu3 }
  0x8d   :  { %v146_v23 = vadd.f32 %v145_v21, %v74_v19  ;;  %v136_v43 = vadd.f32 %v135_v20, %v54_v30 }
  0x8f   :  { %v156_v27 = vmax.f32 %v146_v23, 0.0  ;;  %v132_v42 = vpop.f32.mrf.mxu0  ;;  %v152_v50 = vmax.f32 %v136_v43, 0.0 }
  0x90   :  { %v133_v48 = vadd.f32 %v132_v42, %v49_v39 }
  0x92   :  { %v151_v52 = vmax.f32 %v133_v48, 0.0 }
  0x94   :  { %v137_v25 = vpop.f32.mrf.mxu2  ;;  %v147_v26 = vpop.f32.mrf.mxu3  ;;  %v159_v54 = vpack.c.bf16 %v151_v52, %v150_v51 }
  0x95   :  { %v148_v28 = vadd.f32 %v147_v26, %v79_v24  ;;  %v138_v38 = vadd.f32 %v137_v25, %v59_v35 }
  0x97   :  { %v157_v29 = vmax.f32 %v148_v28, 0.0  ;;  %v153_v46 = vmax.f32 %v138_v38, 0.0 }
  0x99   :  { %v162_v31 = vpack.c.bf16 %v157_v29, %v156_v27  ;;  %v160_v53 = vpack.c.bf16 %v153_v46, %v152_v50 }
  0x9b   :  { %173 = vmatpush.bf16.msra.mxu1 %v162_v31 }
  0x9c   :  { %v140_v34 = vpop.f32.mrf.mxu2 }
  0x9d   :  { %v141_v36 = vadd.f32 %v140_v34, %v64_v22 }
  0x9f   :  { %v154_v44 = vmax.f32 %v141_v36, 0.0 }
  0xa4   :  { %v142_v37 = vpop.f32.mrf.mxu2 }
  0xa5   :  { %v143_v40 = vadd.f32 %v142_v37, %v69_v32 }
  0xa7   :  { %v155_v45 = vmax.f32 %v143_v40, 0.0 }
  0xa9   :  { %v161_v49 = vpack.c.bf16 %v155_v45, %v154_v44 }
  0xab   :  { %174 = vmatpush.bf16.msra.mxu1 %v161_v49 }
  0xaf   :  { %175 = vmatpush.bf16.msra.mxu1 %v160_v53 }
  0xb3   :  { %176 = vmatpush.bf16.msra.mxu1 %v159_v54 }
  0xb6   :  { %219 = vmatmul.msk.bf16.vlgmr.msra.gmra.mxu1 %vm165_vm3, %v158_v55 }
 0x133   :  { %v178_v57 = vpop.f32.mrf.mxu1 }
 0x134   :  { %v179_v58 = vadd.f32 %v178_v57, %v164_v56 }
 0x136   :  { %182 = vst [vmem:[#allocation3] sm:$0x1] %v179_v58 }
 0x137   :  { %193 = dma.vmem_to_hbm [thread:$0]  %s189_s21, 16, %s191_s24, [#allocation4]  }
 0x13b   :  { %v180_v59 = vpop.f32.mrf.mxu1 }
 0x13c   :  { %256 = dma.done.wait [#allocation4], 16  }
 0x13d   :  { %257 = vsyncadd [#allocation4], 4294967280 }
 0x13e   :  { %198 = vsyncpa [#allocation4], 1 }

</bundles_post_ra>
